<compile_context>
chip_gen: v6e
topology: v6e:2x2x1
jax: 0.10.0
libtpu: 0.0.40
codegen_flags: <defaults>
</compile_context>

<pallas_src>
import functools

import jax
import jax.numpy as jnp
from jax.experimental import pallas as pl
from jax.experimental.pallas import tpu as pltpu

# ----- small, TPU-friendly stand-ins for the module's hyper-parameters -----
D = 128            # generator_dim (1024 in the original module)
V = 256            # vocabulary size of the synthetic generator
TOP_K = 2
MAX_SOURCE_LEN = 8
TARGET_LEN = 8
BATCH = 2
NUM_LAYERS = 2
NUM_HEADS = 4
HEAD_DIM = D // NUM_HEADS


# ---------------------------------------------------------------------------
# Fused kernel (single invocation):
#   lm-head logits + 3-layer dynamic-score MLP +
#   log_softmax(V) / log_softmax(K) / logsumexp(K) mixture, softmax-fused.
# Row layout of h_ref: (k, b, t) so each doc's rows are one contiguous slab.
# ---------------------------------------------------------------------------
def _fused_head_kernel(h_ref, lm_w_ref, lm_b_ref, w1_ref, b1_ref, w2_ref,
                       b2_ref, w3_ref, b3_ref, lp_ref, dyn_ref,
                       *, n_docs, rows_per_doc):
    x = h_ref[...]                                                    # (M, D)

    # ---- one fused matmul chain over all B*K*Tp rows (MXU) ----------------
    logits = (jnp.dot(x, lm_w_ref[...], preferred_element_type=jnp.float32)
              + lm_b_ref[...])                                        # (M, V)
    h1 = jnp.maximum(
        jnp.dot(x, w1_ref[...], preferred_element_type=jnp.float32)
        + b1_ref[...], 0.0)                                           # (M, D)
    h2 = jnp.maximum(
        jnp.dot(h1, w2_ref[...], preferred_element_type=jnp.float32)
        + b2_ref[...], 0.0)                                           # (M, D)
    # final (D -> 1) layer: VPU multiply + lane reduce (no 1-col MXU matmul)
    score = jnp.sum(h2 * w3_ref[...], axis=-1, keepdims=True) + b3_ref[0]

    # dynamic scores: one store of the whole (M, 1) column
    dyn_ref[...] = score

    # ---- doc log-softmax over the K docs (contiguous k-major slabs) -------
    sk = [score[kk * rows_per_doc:(kk + 1) * rows_per_doc]
          for kk in range(n_docs)]                                    # (BT, 1)
    dmax = functools.reduce(jnp.maximum, sk)
    dsum = functools.reduce(
        jnp.add, [jnp.exp(s_ - dmax) for s_ in sk])
    dlse = jnp.log(dsum) + dmax                                       # (BT, 1)

    # ---- fused mixture, accumulated online over docs -----------------------
    #   logprobs = log( sum_k exp(score_k - dlse) * p_k / s_k )
    acc = None
    for kk in range(n_docs):
        lk = logits[kk * rows_per_doc:(kk + 1) * rows_per_doc]        # (BT, V)
        m = jnp.max(lk, axis=-1, keepdims=True)
        p = jnp.exp(lk - m)
        s = jnp.sum(p, axis=-1, keepdims=True)
        w = jnp.exp(sk[kk] - dlse)                                    # (BT, 1)
        term = (w * pl.reciprocal(s, approx=True)) * p
        acc = term if acc is None else acc + term
    lp_ref[...] = jnp.log(acc)                                        # (BT, V)


def fused_head(h, params):
    """h: (B, K, T, D) float32 -> (logprobs (B, T, V), dyn_scores (B, K, T))."""
    b, k, t, d = h.shape
    v = params["lm_w"].shape[1]

    # pad T up to a sublane multiple so all tiles/stores are unmasked
    tp = ((t + 7) // 8) * 8
    h_pad = jnp.pad(h, ((0, 0), (0, 0), (0, tp - t), (0, 0)))
    # (k, b, t) row ordering: each doc's rows form one contiguous slab
    h_rows = h_pad.transpose(1, 0, 2, 3).reshape(k * b * tp, d)
    m_rows = k * b * tp
    bt = b * tp

    kernel = functools.partial(_fused_head_kernel, n_docs=k, rows_per_doc=bt)
    lp_rows, dyn_rows = pl.pallas_call(
        kernel,
        out_shape=(jax.ShapeDtypeStruct((bt, v), jnp.float32),
                   jax.ShapeDtypeStruct((m_rows, 1), jnp.float32)),
        grid_spec=pltpu.PrefetchScalarGridSpec(
            num_scalar_prefetch=0,
            grid=(1,),
            in_specs=[
                pl.BlockSpec((m_rows, d), lambda i: (0, 0)),   # h rows
                pl.BlockSpec((d, v), lambda i: (0, 0)),        # lm_w
                pl.BlockSpec((1, v), lambda i: (0, 0)),        # lm_b
                pl.BlockSpec((d, d), lambda i: (0, 0)),        # w1
                pl.BlockSpec((1, d), lambda i: (0, 0)),        # b1
                pl.BlockSpec((d, d), lambda i: (0, 0)),        # w2
                pl.BlockSpec((1, d), lambda i: (0, 0)),        # b2
                pl.BlockSpec((1, d), lambda i: (0, 0)),        # w3 (row form)
                pl.BlockSpec(memory_space=pltpu.MemorySpace.SMEM),  # b3 scalar
            ],
            out_specs=(
                pl.BlockSpec((bt, v), lambda i: (0, 0)),       # logprobs rows
                pl.BlockSpec((m_rows, 1), lambda i: (0, 0)),   # dyn score col
            ),
        ),
        compiler_params=pltpu.CompilerParams(
            dimension_semantics=("arbitrary",),
        ),
    )(h_rows, params["lm_w"], params["lm_b"], params["w1"], params["b1"],
      params["w2"], params["b2"], params["w3"], params["b3"])

    logprobs = lp_rows.reshape(b, tp, v)[:, :t, :]
    dyn = dyn_rows.reshape(k, b, tp).transpose(1, 0, 2)[:, :, :t]
    return logprobs, dyn


# ---------------------------------------------------------------------------
# Synthetic generator (CPM1 stand-in) + full forward
# ---------------------------------------------------------------------------
def synthetic_generator(params, tokens, length, context, span):
    # TODO(synk): CPM1.from_pretrained is an external pretrained Transformer
    # with no Pallas equivalent; replaced by a deterministic embedding stand-in
    # producing identically-shaped hidden_states / present_key_values (its
    # lm-head is fused into the main Pallas kernel).
    del length, context
    n, l = tokens.shape
    emb = jnp.take(params["embedding"], tokens, axis=0)               # (N, L, D)
    hidden = emb * span[..., None].astype(jnp.float32)                # (N, L, D)
    kv = hidden.reshape(n, l, NUM_HEADS, HEAD_DIM).transpose(0, 2, 1, 3)
    present = [[kv * float(i + 1), -kv * float(i + 1)] for i in range(NUM_LAYERS)]
    return hidden, present


def generator_forward(params, input_tokens, input_length, input_context,
                      input_span, *, use_pallas=True):
    del input_span  # the original forward rebuilds the span from scratch
    b = input_tokens.shape[0]
    k, s = TOP_K, MAX_SOURCE_LEN
    total = input_tokens.shape[1]
    target_len = total - k * s

    # --- input re-packing glue (matches the PyTorch preprocessing) ---------
    tokens_src = input_tokens[:, :k * s].reshape(b * k, s)
    input_length_ = jnp.full((b * k,), s + target_len, dtype=jnp.int32)
    ctx_tgt = jnp.tile(input_context[:, k * s:], (1, k)).reshape(b * k, target_len)
    input_context_ = jnp.concatenate(
        [jnp.ones((b * k, s), jnp.int32), ctx_tgt.astype(jnp.int32)], axis=1)
    # span: zero out the left zero-padding of each retrieved source chunk
    nz = jnp.sum((tokens_src != 0).astype(jnp.int32), axis=1)          # (B*K,)
    col = jax.lax.broadcasted_iota(jnp.int32, (b * k, s), 1)
    span_src = (col >= (s - nz)[:, None]).astype(jnp.int32)
    tok_tgt = jnp.tile(input_tokens[:, k * s:], (1, k)).reshape(b * k, target_len)
    input_tokens_ = jnp.concatenate([tokens_src, tok_tgt], axis=1).astype(jnp.int32)
    input_span_ = jnp.concatenate(
        [span_src, jnp.ones((b * k, target_len), jnp.int32)], axis=1)

    hidden_states, present_key_values = synthetic_generator(
        params, input_tokens_, input_length_, input_context_, input_span_)

    # present kv regrouping: split along dim 0 into chunks of top_k, then stack
    present_key_values = [
        [arr.reshape(b, k, *arr.shape[1:]) for arr in layer]
        for layer in present_key_values]
    # TODO(synk): past_key_values incremental-decoding branch (and the stateful
    # self.logits / self.hidden_states cache) is inherently stateful; only the
    # past_key_values=None path is implemented.

    # Only positions [s-1:] are consumed downstream; the lm-head and the score
    # MLP are row-independent, so slicing first is mathematically identical.
    t = target_len + 1
    h_slice = hidden_states.astype(jnp.float32)[:, s - 1:, :].reshape(b, k, t, D)

    if use_pallas:
        logprobs, dynamic_scores = fused_head(h_slice, params)
    else:
        dot = functools.partial(jnp.einsum, precision=jax.lax.Precision.HIGHEST)
        logits = dot('bktd,dv->bktv', h_slice, params["lm_w"]) + params["lm_b"]
        h1 = jnp.maximum(dot('bktd,de->bkte', h_slice, params["w1"])
                         + params["b1"], 0.0)
        h2 = jnp.maximum(dot('bktd,de->bkte', h1, params["w2"])
                         + params["b2"], 0.0)
        dynamic_scores = jnp.sum(h2 * params["w3"], axis=-1) + params["b3"][0]
        seq_lp = jax.nn.log_softmax(logits, axis=-1)
        doc_lp = jax.nn.log_softmax(dynamic_scores, axis=1)
        logprobs = jax.nn.logsumexp(seq_lp + doc_lp[..., None], axis=1)

    return logprobs, dynamic_scores, present_key_values


# ---------------------------------------------------------------------------
# Deterministic parameter init (shapes implied by the module's __init__)
# ---------------------------------------------------------------------------
def init_params(key):
    ks = jax.random.split(key, 6)
    sc = 0.05
    return dict(
        embedding=jax.random.normal(ks[0], (V, D), jnp.float32) * sc,
        lm_w=jax.random.normal(ks[1], (D, V), jnp.float32) * sc,
        lm_b=jax.random.normal(ks[2], (1, V), jnp.float32) * sc,
        w1=jax.random.normal(ks[3], (D, D), jnp.float32) * sc,
        b1=jnp.zeros((1, D), jnp.float32),
        w2=jax.random.normal(ks[4], (D, D), jnp.float32) * sc,
        b2=jnp.zeros((1, D), jnp.float32),
        w3=jax.random.normal(ks[5], (1, D), jnp.float32) * sc,   # Linear(D,1) row
        b3=jnp.zeros((1,), jnp.float32),
    )


if __name__ == "__main__":
    key = jax.random.PRNGKey(0)
    pk, tk, ck = jax.random.split(key, 3)
    params = init_params(pk)

    total = TOP_K * MAX_SOURCE_LEN + TARGET_LEN
    input_tokens = jax.random.randint(tk, (BATCH, total), 1, V, dtype=jnp.int32)
    # left-pad some retrieved source chunks with zeros to exercise the span logic
    for bi in range(BATCH):
        for ki in range(TOP_K):
            p = (bi + 2 * ki + 1) % 4
            st = ki * MAX_SOURCE_LEN
            input_tokens = input_tokens.at[bi, st:st + p].set(0)
    input_context = jax.random.randint(ck, (BATCH, total), 0, 2, dtype=jnp.int32)
    input_length = jnp.full((BATCH,), total, dtype=jnp.int32)
    input_span = jnp.ones((BATCH, total), dtype=jnp.int32)

    fwd = jax.jit(functools.partial(generator_forward, use_pallas=True))
    logprobs, dyn_scores, present_kv = fwd(
        params, input_tokens, input_length, input_context, input_span)
    jax.block_until_ready((logprobs, dyn_scores, present_kv))

    # pure-JAX reference for validation
    ref_lp, ref_dyn, _ = generator_forward(
        params, input_tokens, input_length, input_context, input_span,
        use_pallas=False)

    assert logprobs.shape == (BATCH, TARGET_LEN + 1, V)
    assert dyn_scores.shape == (BATCH, TOP_K, TARGET_LEN + 1)
    assert jnp.allclose(logprobs, ref_lp, atol=2e-3, rtol=2e-3)
    assert jnp.allclose(dyn_scores, ref_dyn, atol=2e-3, rtol=2e-3)

    print("KERNEL_OK")
</pallas_src>

<mosaic_0001>
module attributes {stable_mosaic.version = 11 : i64} {
  func.func @_fused_head_kernel(%arg0: i32, %arg1: memref<64x128xf32, #tpu.memory_space<vmem>>, %arg2: memref<128x256xf32, #tpu.memory_space<vmem>>, %arg3: memref<1x256xf32, #tpu.memory_space<vmem>>, %arg4: memref<128x128xf32, #tpu.memory_space<vmem>>, %arg5: memref<1x128xf32, #tpu.memory_space<vmem>>, %arg6: memref<128x128xf32, #tpu.memory_space<vmem>>, %arg7: memref<1x128xf32, #tpu.memory_space<vmem>>, %arg8: memref<1x128xf32, #tpu.memory_space<vmem>>, %arg9: memref<1xf32, #tpu.memory_space<smem>>, %arg10: memref<32x256xf32, #tpu.memory_space<vmem>>, %arg11: memref<64x1xf32, #tpu.memory_space<vmem>>) attributes {dimension_semantics = [#tpu.dimension_semantics<arbitrary>], iteration_bounds = array<i64: 1>, scalar_prefetch = 0 : i64, scratch_operands = 0 : i64, tpu.core_type = #tpu.core_type<tc>, window_params = [{pipeline_mode = #tpu.pipeline_mode<synchronous>, transform_indices = @transform_0, window_bounds = array<i64: 64, 128>}, {pipeline_mode = #tpu.pipeline_mode<synchronous>, transform_indices = @transform_1, window_bounds = array<i64: 128, 256>}, {pipeline_mode = #tpu.pipeline_mode<synchronous>, transform_indices = @transform_2, window_bounds = array<i64: 1, 256>}, {pipeline_mode = #tpu.pipeline_mode<synchronous>, transform_indices = @transform_3, window_bounds = array<i64: 128, 128>}, {pipeline_mode = #tpu.pipeline_mode<synchronous>, transform_indices = @transform_4, window_bounds = array<i64: 1, 128>}, {pipeline_mode = #tpu.pipeline_mode<synchronous>, transform_indices = @transform_5, window_bounds = array<i64: 128, 128>}, {pipeline_mode = #tpu.pipeline_mode<synchronous>, transform_indices = @transform_6, window_bounds = array<i64: 1, 128>}, {pipeline_mode = #tpu.pipeline_mode<synchronous>, transform_indices = @transform_7, window_bounds = array<i64: 1, 128>}, {transform_indices = @transform_8, window_bounds = array<i64: 1>}, {pipeline_mode = #tpu.pipeline_mode<synchronous>, transform_indices = @transform_9, window_bounds = array<i64: 32, 256>}, {pipeline_mode = #tpu.pipeline_mode<synchronous>, transform_indices = @transform_10, window_bounds = array<i64: 64, 1>}]} {
    %c0 = arith.constant 0 : index
    %c0_0 = arith.constant 0 : index
    %0 = vector.load %arg1[%c0, %c0_0] : memref<64x128xf32, #tpu.memory_space<vmem>>, vector<64x128xf32>
    %c0_1 = arith.constant 0 : index
    %c0_2 = arith.constant 0 : index
    %1 = vector.load %arg2[%c0_1, %c0_2] : memref<128x256xf32, #tpu.memory_space<vmem>>, vector<128x256xf32>
    %cst = arith.constant dense<0.000000e+00> : vector<64x256xf32>
    %2 = tpu.matmul %0, %1, %cst {dimension_numbers = #tpu.dot_dimension_numbers<[1], [0], [0], [1], [0, 0, 1, 1], [], []>} : vector<64x128xf32>, vector<128x256xf32>, vector<64x256xf32> -> vector<64x256xf32>
    %c0_3 = arith.constant 0 : index
    %c0_4 = arith.constant 0 : index
    %3 = vector.load %arg3[%c0_3, %c0_4] : memref<1x256xf32, #tpu.memory_space<vmem>>, vector<1x256xf32>
    %4 = vector.broadcast %3 : vector<1x256xf32> to vector<64x256xf32>
    %5 = arith.addf %2, %4 : vector<64x256xf32>
    %c0_5 = arith.constant 0 : index
    %c0_6 = arith.constant 0 : index
    %6 = vector.load %arg4[%c0_5, %c0_6] : memref<128x128xf32, #tpu.memory_space<vmem>>, vector<128x128xf32>
    %cst_7 = arith.constant dense<0.000000e+00> : vector<64x128xf32>
    %7 = tpu.matmul %0, %6, %cst_7 {dimension_numbers = #tpu.dot_dimension_numbers<[1], [0], [0], [1], [0, 0, 1, 1], [], []>} : vector<64x128xf32>, vector<128x128xf32>, vector<64x128xf32> -> vector<64x128xf32>
    %c0_8 = arith.constant 0 : index
    %c0_9 = arith.constant 0 : index
    %8 = vector.load %arg5[%c0_8, %c0_9] : memref<1x128xf32, #tpu.memory_space<vmem>>, vector<1x128xf32>
    %9 = vector.broadcast %8 : vector<1x128xf32> to vector<64x128xf32>
    %10 = arith.addf %7, %9 : vector<64x128xf32>
    %cst_10 = arith.constant 0.000000e+00 : f32
    %11 = vector.broadcast %cst_10 : f32 to vector<64x128xf32>
    %12 = arith.maximumf %10, %11 : vector<64x128xf32>
    %c0_11 = arith.constant 0 : index
    %c0_12 = arith.constant 0 : index
    %13 = vector.load %arg6[%c0_11, %c0_12] : memref<128x128xf32, #tpu.memory_space<vmem>>, vector<128x128xf32>
    %cst_13 = arith.constant dense<0.000000e+00> : vector<64x128xf32>
    %14 = tpu.matmul %12, %13, %cst_13 {dimension_numbers = #tpu.dot_dimension_numbers<[1], [0], [0], [1], [0, 0, 1, 1], [], []>} : vector<64x128xf32>, vector<128x128xf32>, vector<64x128xf32> -> vector<64x128xf32>
    %c0_14 = arith.constant 0 : index
    %c0_15 = arith.constant 0 : index
    %15 = vector.load %arg7[%c0_14, %c0_15] : memref<1x128xf32, #tpu.memory_space<vmem>>, vector<1x128xf32>
    %16 = vector.broadcast %15 : vector<1x128xf32> to vector<64x128xf32>
    %17 = arith.addf %14, %16 : vector<64x128xf32>
    %cst_16 = arith.constant 0.000000e+00 : f32
    %18 = vector.broadcast %cst_16 : f32 to vector<64x128xf32>
    %19 = arith.maximumf %17, %18 : vector<64x128xf32>
    %c0_17 = arith.constant 0 : index
    %c0_18 = arith.constant 0 : index
    %20 = vector.load %arg8[%c0_17, %c0_18] : memref<1x128xf32, #tpu.memory_space<vmem>>, vector<1x128xf32>
    %21 = vector.broadcast %20 : vector<1x128xf32> to vector<64x128xf32>
    %22 = arith.mulf %19, %21 : vector<64x128xf32>
    %cst_19 = arith.constant dense<0.000000e+00> : vector<64xf32>
    %23 = vector.multi_reduction <add>, %22, %cst_19 [1] : vector<64x128xf32> to vector<64xf32>
    %24 = vector.shape_cast %23 : vector<64xf32> to vector<64x1xf32>
    %c0_20 = arith.constant 0 : index
    %25 = memref.load %arg9[%c0_20] : memref<1xf32, #tpu.memory_space<smem>>
    %26 = vector.broadcast %25 : f32 to vector<64x1xf32>
    %27 = arith.addf %24, %26 : vector<64x1xf32>
    %c0_21 = arith.constant 0 : index
    %c0_22 = arith.constant 0 : index
    %28 = vector.load %arg11[%c0_21, %c0_22] : memref<64x1xf32, #tpu.memory_space<vmem>>, vector<64x1xf32>
    tpu.vector_store %arg11[%c0_21, %c0_22], %27 {strides = array<i32>} : memref<64x1xf32, #tpu.memory_space<vmem>>, vector<64x1xf32>,
    %29 = vector.extract_strided_slice %27 {offsets = [0, 0], sizes = [32, 1], strides = [1, 1]} : vector<64x1xf32> to vector<32x1xf32>
    %30 = vector.extract_strided_slice %27 {offsets = [32, 0], sizes = [32, 1], strides = [1, 1]} : vector<64x1xf32> to vector<32x1xf32>
    %31 = arith.maximumf %29, %30 : vector<32x1xf32>
    %32 = arith.subf %29, %31 : vector<32x1xf32>
    %33 = math.exp %32 : vector<32x1xf32>
    %34 = arith.subf %30, %31 : vector<32x1xf32>
    %35 = math.exp %34 : vector<32x1xf32>
    %36 = arith.addf %33, %35 : vector<32x1xf32>
    %37 = math.log %36 : vector<32x1xf32>
    %38 = arith.addf %37, %31 : vector<32x1xf32>
    %39 = vector.extract_strided_slice %5 {offsets = [0, 0], sizes = [32, 256], strides = [1, 1]} : vector<64x256xf32> to vector<32x256xf32>
    %cst_23 = arith.constant dense<0xFF800000> : vector<32xf32>
    %40 = vector.multi_reduction <maximumf>, %39, %cst_23 [1] : vector<32x256xf32> to vector<32xf32>
    %41 = vector.shape_cast %40 : vector<32xf32> to vector<32x1xf32>
    %42 = vector.broadcast %41 : vector<32x1xf32> to vector<32x256xf32>
    %43 = arith.subf %39, %42 : vector<32x256xf32>
    %44 = math.exp %43 : vector<32x256xf32>
    %cst_24 = arith.constant dense<0.000000e+00> : vector<32xf32>
    %45 = vector.multi_reduction <add>, %44, %cst_24 [1] : vector<32x256xf32> to vector<32xf32>
    %46 = vector.shape_cast %45 : vector<32xf32> to vector<32x1xf32>
    %47 = arith.subf %29, %38 : vector<32x1xf32>
    %48 = math.exp %47 : vector<32x1xf32>
    %49 = tpu.reciprocal %46 {approx = true} : vector<32x1xf32> -> vector<32x1xf32>
    %50 = arith.mulf %48, %49 : vector<32x1xf32>
    %51 = vector.broadcast %50 : vector<32x1xf32> to vector<32x256xf32>
    %52 = arith.mulf %51, %44 : vector<32x256xf32>
    %53 = vector.extract_strided_slice %5 {offsets = [32, 0], sizes = [32, 256], strides = [1, 1]} : vector<64x256xf32> to vector<32x256xf32>
    %cst_25 = arith.constant dense<0xFF800000> : vector<32xf32>
    %54 = vector.multi_reduction <maximumf>, %53, %cst_25 [1] : vector<32x256xf32> to vector<32xf32>
    %55 = vector.shape_cast %54 : vector<32xf32> to vector<32x1xf32>
    %56 = vector.broadcast %55 : vector<32x1xf32> to vector<32x256xf32>
    %57 = arith.subf %53, %56 : vector<32x256xf32>
    %58 = math.exp %57 : vector<32x256xf32>
    %cst_26 = arith.constant dense<0.000000e+00> : vector<32xf32>
    %59 = vector.multi_reduction <add>, %58, %cst_26 [1] : vector<32x256xf32> to vector<32xf32>
    %60 = vector.shape_cast %59 : vector<32xf32> to vector<32x1xf32>
    %61 = arith.subf %30, %38 : vector<32x1xf32>
    %62 = math.exp %61 : vector<32x1xf32>
    %63 = tpu.reciprocal %60 {approx = true} : vector<32x1xf32> -> vector<32x1xf32>
    %64 = arith.mulf %62, %63 : vector<32x1xf32>
    %65 = vector.broadcast %64 : vector<32x1xf32> to vector<32x256xf32>
    %66 = arith.mulf %65, %58 : vector<32x256xf32>
    %67 = arith.addf %52, %66 : vector<32x256xf32>
    %68 = math.log %67 : vector<32x256xf32>
    %c0_27 = arith.constant 0 : index
    %c0_28 = arith.constant 0 : index
    %69 = vector.load %arg10[%c0_27, %c0_28] : memref<32x256xf32, #tpu.memory_space<vmem>>, vector<32x256xf32>
    tpu.vector_store %arg10[%c0_27, %c0_28], %68 {strides = array<i32>} : memref<32x256xf32, #tpu.memory_space<vmem>>, vector<32x256xf32>,
    return
  }
  func.func @transform_0(%arg0: i32) -> (i32, i32) {
    %c0_i32 = arith.constant 0 : i32
    %c0_i32_0 = arith.constant 0 : i32
    %c0_i32_1 = arith.constant 0 : i32
    return %c0_i32, %c0_i32_0 : i32, i32
  }
  func.func @transform_1(%arg0: i32) -> (i32, i32) {
    %c0_i32 = arith.constant 0 : i32
    %c0_i32_0 = arith.constant 0 : i32
    %c0_i32_1 = arith.constant 0 : i32
    return %c0_i32, %c0_i32_0 : i32, i32
  }
  func.func @transform_2(%arg0: i32) -> (i32, i32) {
    %c0_i32 = arith.constant 0 : i32
    %c0_i32_0 = arith.constant 0 : i32
    %c0_i32_1 = arith.constant 0 : i32
    return %c0_i32, %c0_i32_0 : i32, i32
  }
  func.func @transform_3(%arg0: i32) -> (i32, i32) {
    %c0_i32 = arith.constant 0 : i32
    %c0_i32_0 = arith.constant 0 : i32
    %c0_i32_1 = arith.constant 0 : i32
    return %c0_i32, %c0_i32_0 : i32, i32
  }
  func.func @transform_4(%arg0: i32) -> (i32, i32) {
    %c0_i32 = arith.constant 0 : i32
    %c0_i32_0 = arith.constant 0 : i32
    %c0_i32_1 = arith.constant 0 : i32
    return %c0_i32, %c0_i32_0 : i32, i32
  }
  func.func @transform_5(%arg0: i32) -> (i32, i32) {
    %c0_i32 = arith.constant 0 : i32
    %c0_i32_0 = arith.constant 0 : i32
    %c0_i32_1 = arith.constant 0 : i32
    return %c0_i32, %c0_i32_0 : i32, i32
  }
  func.func @transform_6(%arg0: i32) -> (i32, i32) {
    %c0_i32 = arith.constant 0 : i32
    %c0_i32_0 = arith.constant 0 : i32
    %c0_i32_1 = arith.constant 0 : i32
    return %c0_i32, %c0_i32_0 : i32, i32
  }
  func.func @transform_7(%arg0: i32) -> (i32, i32) {
    %c0_i32 = arith.constant 0 : i32
    %c0_i32_0 = arith.constant 0 : i32
    %c0_i32_1 = arith.constant 0 : i32
    return %c0_i32, %c0_i32_0 : i32, i32
  }
  func.func @transform_8(%arg0: i32) -> i32 {
    %c0_i32 = arith.constant 0 : i32
    %c0_i32_0 = arith.constant 0 : i32
    return %c0_i32 : i32
  }
  func.func @transform_9(%arg0: i32) -> (i32, i32) {
    %c0_i32 = arith.constant 0 : i32
    %c0_i32_0 = arith.constant 0 : i32
    %c0_i32_1 = arith.constant 0 : i32
    return %c0_i32, %c0_i32_0 : i32, i32
  }
  func.func @transform_10(%arg0: i32) -> (i32, i32) {
    %c0_i32 = arith.constant 0 : i32
    %c0_i32_0 = arith.constant 0 : i32
    %c0_i32_1 = arith.constant 0 : i32
    return %c0_i32, %c0_i32_0 : i32, i32
  }
}

</mosaic_0001>

<bundles_post_ra>
// kernel: generator_forward.1
= control target key start
LH: loop header
LB: loop body
LE: loop exit
PB: predicated region body
PF: predicated region fallthrough
CT: control target
= control target key end

     0   :  { %v1034_v3 = vmov 0.0   ;;  %vm513_vm0 = vcmask 7168   ;;  %s1611_s1 = inlined_call_operand.vmem [shape: f32[128,256], index: 1, kind: input, shape index: {}]   ;;  %s1612_s3 = inlined_call_operand.vmem [shape: f32[128,128], index: 3, kind: input, shape index: {}]   ;;  %s1613_s0 = inlined_call_operand.vmem [shape: f32[64,128], index: 0, kind: input, shape index: {}]   ;;  %s1614_s5 = inlined_call_operand.vmem [shape: f32[128,128], index: 5, kind: input, shape index: {}]   ;;  %s1615_s2 = inlined_call_operand.vmem [shape: f32[1,256], index: 2, kind: input, shape index: {}]   ;;  %s1616_s4 = inlined_call_operand.vmem [shape: f32[1,128], index: 4, kind: input, shape index: {}]   ;;  %s1617_s6 = inlined_call_operand.vmem [shape: f32[1,128], index: 6, kind: input, shape index: {}]   ;;  %s1618_s7 = inlined_call_operand.vmem [shape: f32[1,128], index: 7, kind: input, shape index: {}]   ;;  %s1619_s8 = inlined_call_operand.<no memory space> [shape: f32[1], index: 8, kind: input, shape index: {}]   ;;  %s1620_s10 = inlined_call_operand.vmem [shape: f32[64,1], index: 10, kind: output, shape index: {1}]   ;;  %s1621_s9 = inlined_call_operand.vmem [shape: f32[32,256], index: 9, kind: output, shape index: {0}]  }
   0x1   :  { %v74_v0 = vld [vmem:[%s1611_s1 + $0xf8] sm:$0xff]  ;;  %v73_v2 = vld [vmem:[%s1611_s1 + $0xf0] sm:$0xff]  ;;  %151 = vmatprep.mubr.f32.mxu0 %v1034_v3  ;;  %v72_v4 = vld [vmem:[%s1611_s1 + $0xe8] sm:$0xff] }
   0x2   :  { %v215_v1 = vld [vmem:[%s1612_s3 + $0x78] sm:$0xff]  ;;  %87 = vmatprep.subr.mxu0 %v74_v0  ;;  %v214_v5 = vld [vmem:[%s1612_s3 + $0x70] sm:$0xff]  ;;  %v71_v6 = vld [vmem:[%s1611_s1 + $0xe0] sm:$0xff] }
   0x3   :  { %809 = vmatprep.subr.mxu1 %v215_v1  ;;  %88 = vmatpush1.msra.mxu0 %v73_v2  ;;  %v70_v7 = vld [vmem:[%s1611_s1 + $0xd8] sm:$0xff]  ;;  %v213_v8 = vld [vmem:[%s1612_s3 + $0x68] sm:$0xff]  ;;  %v69_v9 = vld [vmem:[%s1611_s1 + $0xd0] sm:$0xff] }
   0x4   :  { %810 = vmatpush3.msra.mxu1 %v215_v1  ;;  %89 = vmatprep.subr.mxu0 %v72_v4  ;;  %v68_v10 = vld [vmem:[%s1611_s1 + $0xc8] sm:$0xff]  ;;  %v212_v11 = vld [vmem:[%s1612_s3 + $0x60] sm:$0xff]  ;;  %v66_v13 = vld [vmem:[%s1611_s1 + $0xb8] sm:$0xff] }
   0x5   :  { %811 = vmatprep.subr.mxu1 %v214_v5  ;;  %90 = vmatpush1.msra.mxu0 %v71_v6  ;;  %v67_v12 = vld [vmem:[%s1611_s1 + $0xc0] sm:$0xff]  ;;  %v211_v14 = vld [vmem:[%s1612_s3 + $0x58] sm:$0xff]  ;;  %v65_v15 = vld [vmem:[%s1611_s1 + $0xb0] sm:$0xff] }
   0x6   :  { %812 = vmatpush3.msra.mxu1 %v214_v5  ;;  %91 = vmatprep.subr.mxu0 %v70_v7  ;;  %v64_v16 = vld [vmem:[%s1611_s1 + $0xa8] sm:$0xff]  ;;  %v210_v17 = vld [vmem:[%s1612_s3 + $0x50] sm:$0xff]  ;;  %v63_v18 = vld [vmem:[%s1611_s1 + $0xa0] sm:$0xff] }
   0x7   :  { %813 = vmatprep.subr.mxu1 %v213_v8  ;;  %92 = vmatpush1.msra.mxu0 %v69_v9  ;;  %v62_v19 = vld [vmem:[%s1611_s1 + $0x98] sm:$0xff]  ;;  %v209_v20 = vld [vmem:[%s1612_s3 + $0x48] sm:$0xff]  ;;  %v61_v21 = vld [vmem:[%s1611_s1 + $0x90] sm:$0xff]  ;;  %v77_v9 = vlaneseq }
   0x8   :  { %814 = vmatpush3.msra.mxu1 %v213_v8  ;;  %93 = vmatprep.subr.mxu0 %v68_v10  ;;  %v60_v22 = vld [vmem:[%s1611_s1 + $0x88] sm:$0xff]  ;;  %v208_v23 = vld [vmem:[%s1612_s3 + $0x40] sm:$0xff]  ;;  %v58_v25 = vld [vmem:[%s1611_s1 + $0x78] sm:$0xff] }
   0x9   :  { %815 = vmatprep.subr.mxu1 %v212_v11  ;;  %94 = vmatpush1.msra.mxu0 %v67_v12  ;;  %v59_v24 = vld [vmem:[%s1611_s1 + $0x80] sm:$0xff]  ;;  %v207_v26 = vld [vmem:[%s1612_s3 + $0x38] sm:$0xff]  ;;  %v57_v27 = vld [vmem:[%s1611_s1 + $0x70] sm:$0xff]  ;;  %v78_v10 = vshrl.u32 %v77_v9, 7 }
   0xa   :  { %816 = vmatpush3.msra.mxu1 %v212_v11  ;;  %95 = vmatprep.subr.mxu0 %v66_v13  ;;  %v56_v28 = vld [vmem:[%s1611_s1 + $0x68] sm:$0xff]  ;;  %v206_v29 = vld [vmem:[%s1612_s3 + $0x30] sm:$0xff]  ;;  %v55_v30 = vld [vmem:[%s1611_s1 + $0x60] sm:$0xff] }
   0xb   :  { %817 = vmatprep.subr.mxu1 %v211_v14  ;;  %96 = vmatpush1.msra.mxu0 %v65_v15  ;;  %v54_v31 = vld [vmem:[%s1611_s1 + $0x58] sm:$0xff]  ;;  %v205_v32 = vld [vmem:[%s1612_s3 + $0x28] sm:$0xff]  ;;  %v53_v33 = vld [vmem:[%s1611_s1 + $0x50] sm:$0xff]  ;;  %v79_v11 = vsub.s32 0, %v78_v10  ;;  %v83_v13 = vsub.s32 1, %v78_v10 }
   0xc   :  { %818 = vmatpush3.msra.mxu1 %v211_v14  ;;  %97 = vmatprep.subr.mxu0 %v64_v16  ;;  %v52_v34 = vld [vmem:[%s1611_s1 + $0x48] sm:$0xff]  ;;  %v204_v35 = vld [vmem:[%s1612_s3 + $0x20] sm:$0xff]  ;;  %v50_v37 = vld [vmem:[%s1611_s1 + $0x38] sm:$0xff] }
   0xd   :  { %819 = vmatprep.subr.mxu1 %v210_v17  ;;  %98 = vmatpush1.msra.mxu0 %v63_v18  ;;  %v51_v36 = vld [vmem:[%s1611_s1 + $0x40] sm:$0xff]  ;;  %v203_v38 = vld [vmem:[%s1612_s3 + $0x18] sm:$0xff]  ;;  %v49_v39 = vld [vmem:[%s1611_s1 + $0x30] sm:$0xff] }
   0xe   :  { %820 = vmatpush3.msra.mxu1 %v210_v17  ;;  %99 = vmatprep.subr.mxu0 %v62_v19  ;;  %v48_v40 = vld [vmem:[%s1611_s1 + $0x28] sm:$0xff]  ;;  %v202_v41 = vld [vmem:[%s1612_s3 + $0x10] sm:$0xff]  ;;  %v47_v42 = vld [vmem:[%s1611_s1 + $0x20] sm:$0xff] }
   0xf   :  { %821 = vmatprep.subr.mxu1 %v209_v20  ;;  %100 = vmatpush1.msra.mxu0 %v61_v21  ;;  %v46_v43 = vld [vmem:[%s1611_s1 + $0x18] sm:$0xff]  ;;  %v201_v44 = vld [vmem:[%s1612_s3 + $0x8] sm:$0xff]  ;;  %v45_v45 = vld [vmem:[%s1611_s1 + $0x10] sm:$0xff] }
  0x10   :  { %822 = vmatpush3.msra.mxu1 %v209_v20  ;;  %101 = vmatprep.subr.mxu0 %v60_v22  ;;  %v44_v46 = vld [vmem:[%s1611_s1 + $0x8] sm:$0xff]  ;;  %v200_v47 = vld [vmem:[%s1612_s3] sm:$0xff]  ;;  %v37_v51 = vld [vmem:[%s1613_s0 + $0x10] sm:$0xff] }
  0x11   :  { %823 = vmatprep.subr.mxu1 %v208_v23  ;;  %102 = vmatpush1.msra.mxu0 %v59_v24  ;;  %v43_v48 = vld [vmem:[%s1611_s1] sm:$0xff]  ;;  %v36_v50 = vld [vmem:[%s1613_s0 + $0x8] sm:$0xff]  ;;  %v351_v52 = vld [vmem:[%s1614_s5 + $0x78] sm:$0xff] }
  0x12   :  { %824 = vmatpush3.msra.mxu1 %v208_v23  ;;  %103 = vmatprep.subr.mxu0 %v58_v25  ;;  %v35_v49 = vld [vmem:[%s1613_s0] sm:$0xff]  ;;  %v350_v53 = vld [vmem:[%s1614_s5 + $0x70] sm:$0xff]  ;;  %v38_v54 = vld [vmem:[%s1613_s0 + $0x18] sm:$0xff] }
  0x13   :  { %825 = vmatprep.subr.mxu1 %v207_v26  ;;  %104 = vmatpush1.msra.mxu0 %v57_v27  ;;  %v39_v55 = vld [vmem:[%s1613_s0 + $0x20] sm:$0xff]  ;;  %v349_v56 = vld [vmem:[%s1614_s5 + $0x68] sm:$0xff]  ;;  %v41_v58 = vld [vmem:[%s1613_s0 + $0x30] sm:$0xff] }
  0x14   :  { %826 = vmatpush3.msra.mxu1 %v207_v26  ;;  %105 = vmatprep.subr.mxu0 %v56_v28  ;;  %v40_v57 = vld [vmem:[%s1613_s0 + $0x28] sm:$0xff]  ;;  %v348_v59 = vld [vmem:[%s1614_s5 + $0x60] sm:$0xff]  ;;  %v42_v60 = vld [vmem:[%s1613_s0 + $0x38] sm:$0xff] }
  0x15   :  { %827 = vmatprep.subr.mxu1 %v206_v29  ;;  %106 = vmatpush1.msra.mxu0 %v55_v30  ;;  %v347_v61 = vld [vmem:[%s1614_s5 + $0x58] sm:$0xff]  ;;  %v346_v62 = vld [vmem:[%s1614_s5 + $0x50] sm:$0xff]  ;;  %v345_v63 = vld [vmem:[%s1614_s5 + $0x48] sm:$0xff] }
  0x16   :  { %828 = vmatpush3.msra.mxu1 %v206_v29  ;;  %107 = vmatprep.subr.mxu0 %v54_v31  ;;  %v344_v0 = vld [vmem:[%s1614_s5 + $0x40] sm:$0xff]  ;;  %v343_v1 = vld [vmem:[%s1614_s5 + $0x38] sm:$0xff]  ;;  %v342_v2 = vld [vmem:[%s1614_s5 + $0x30] sm:$0xff] }
  0x17   :  { %829 = vmatprep.subr.mxu1 %v205_v32  ;;  %108 = vmatpush1.msra.mxu0 %v53_v33  ;;  %v341_v4 = vld [vmem:[%s1614_s5 + $0x28] sm:$0xff]  ;;  %v340_v5 = vld [vmem:[%s1614_s5 + $0x20] sm:$0xff]  ;;  %v338_v6 = vld [vmem:[%s1614_s5 + $0x10] sm:$0xff] }
  0x18   :  { %830 = vmatpush3.msra.mxu1 %v205_v32  ;;  %109 = vmatprep.subr.mxu0 %v52_v34  ;;  %v337_v7 = vld [vmem:[%s1614_s5 + $0x8] sm:$0xff]  ;;  %v336_v8 = vld [vmem:[%s1614_s5] sm:$0xff] }
  0x19   :  { %831 = vmatprep.subr.mxu1 %v204_v35  ;;  %110 = vmatpush1.msra.mxu0 %v51_v36  ;;  %v75_v12 = vld [vmem:[%s1615_s2] sm:$0x3] }
  0x1a   :  { %832 = vmatpush3.msra.mxu1 %v204_v35  ;;  %111 = vmatprep.subr.mxu0 %v50_v37  ;;  %v1317_v14 = vrot.slane %v75_v12, %v79_v11  ;;  %v1319_v15 = vrot.slane %v75_v12, %v83_v13  ;;  %v758_v17 = vld [vmem:[%s1616_s4] ss:$0 sm:$0xff] }
  0x1b   :  { %833 = vmatprep.subr.mxu1 %v203_v38  ;;  %112 = vmatpush1.msra.mxu0 %v49_v39 }
  0x1c   :  { %834 = vmatpush3.msra.mxu1 %v203_v38  ;;  %113 = vmatprep.subr.mxu0 %v48_v40 }
  0x1d   :  { %835 = vmatprep.subr.mxu1 %v202_v41  ;;  %114 = vmatpush1.msra.mxu0 %v47_v42 }
  0x1e   :  { %836 = vmatpush3.msra.mxu1 %v202_v41  ;;  %115 = vmatprep.subr.mxu0 %v46_v43 }
  0x1f   :  { %837 = vmatprep.subr.mxu1 %v201_v44  ;;  %116 = vmatpush1.msra.mxu0 %v45_v45 }
  0x20   :  { %838 = vmatpush3.msra.mxu1 %v201_v44  ;;  %117 = vmatprep.subr.mxu0 %v44_v46 }
  0x21   :  { %839 = vmatprep.subr.mxu1 %v200_v47  ;;  %118 = vmatpush1.msra.mxu0 %v43_v48 }
  0x22   :  { %840 = vmatpush3.msra.mxu1 %v200_v47  ;;  %841 = vmatprep.mubr.f32.mxu1 %v35_v49 }
  0x23   :  { %152 = vmatmul.mubr.f32.vlgmr.msra.gmra.mxu0 %v35_v49  ;;  %842 = vmatmul.mubr.f32.vlgmr.msra.gmra.mxu1 %v36_v50 }
  0x24   :  { %157 = vmatprep.mubr.f32.mxu0 %v1034_v3  ;;  %844 = vmatprep.mubr.f32.mxu1 %v37_v51 }
  0x25   :  { %853 = vmatprep.subr.mxu0 %v351_v52  ;;  %897 = vmatprep.subr.mxu1 %v351_v52 }
  0x26   :  { %854 = vmatpush3.msra.mxu0 %v351_v52  ;;  %913 = vmatpush3.msra.mxu1 %v351_v52 }
  0x27   :  { %158 = vmatmul.mubr.f32.gmra.mxu0 %v36_v50  ;;  %855 = vmatprep.subr.mxu0 %v350_v53 }
  0x28   :  { %845 = vmatmul.mubr.f32.gmra.mxu1 %v38_v54  ;;  %163 = vmatprep.mubr.f32.mxu0 %v1034_v3 }
  0x29   :  { %847 = vmatprep.mubr.f32.mxu1 %v39_v55  ;;  %856 = vmatpush3.msra.mxu0 %v350_v53 }
  0x2a   :  { %857 = vmatprep.subr.mxu0 %v349_v56  ;;  %898 = vmatprep.subr.mxu1 %v350_v53 }
  0x2b   :  { %164 = vmatmul.mubr.f32.gmra.mxu0 %v37_v51  ;;  %914 = vmatpush3.msra.mxu1 %v350_v53 }
  0x2c   :  { %848 = vmatmul.mubr.f32.gmra.mxu1 %v40_v57  ;;  %169 = vmatprep.mubr.f32.mxu0 %v1034_v3 }
  0x2d   :  { %850 = vmatprep.mubr.f32.mxu1 %v41_v58  ;;  %858 = vmatpush3.msra.mxu0 %v349_v56 }
  0x2e   :  { %859 = vmatprep.subr.mxu0 %v348_v59  ;;  %899 = vmatprep.subr.mxu1 %v349_v56 }
  0x2f   :  { %170 = vmatmul.mubr.f32.gmra.mxu0 %v38_v54  ;;  %915 = vmatpush3.msra.mxu1 %v349_v56 }
  0x30   :  { %851 = vmatmul.mubr.f32.gmra.mxu1 %v42_v60  ;;  %175 = vmatprep.mubr.f32.mxu0 %v1034_v3 }
  0x31   :  { %860 = vmatpush3.msra.mxu0 %v348_v59  ;;  %900 = vmatprep.subr.mxu1 %v348_v59 }
  0x32   :  { %861 = vmatprep.subr.mxu0 %v347_v61  ;;  %916 = vmatpush3.msra.mxu1 %v348_v59 }
  0x33   :  { %176 = vmatmul.mubr.f32.gmra.mxu0 %v39_v55  ;;  %901 = vmatprep.subr.mxu1 %v347_v61 }
  0x34   :  { %181 = vmatprep.mubr.f32.mxu0 %v1034_v3  ;;  %862 = vmatpush3.msra.mxu0 %v347_v61 }
  0x35   :  { %863 = vmatprep.subr.mxu0 %v346_v62  ;;  %917 = vmatpush3.msra.mxu1 %v347_v61 }
  0x36   :  { %864 = vmatpush3.msra.mxu0 %v346_v62  ;;  %902 = vmatprep.subr.mxu1 %v346_v62 }
  0x37   :  { %182 = vmatmul.mubr.f32.gmra.mxu0 %v40_v57  ;;  %865 = vmatprep.subr.mxu0 %v345_v63 }
  0x38   :  { %187 = vmatprep.mubr.f32.mxu0 %v1034_v3  ;;  %866 = vmatpush3.msra.mxu0 %v345_v63 }
  0x39   :  { %867 = vmatprep.subr.mxu0 %v344_v0  ;;  %918 = vmatpush3.msra.mxu1 %v346_v62 }
  0x3a   :  { %868 = vmatpush3.msra.mxu0 %v344_v0  ;;  %903 = vmatprep.subr.mxu1 %v345_v63 }
  0x3b   :  { %188 = vmatmul.mubr.f32.gmra.mxu0 %v41_v58  ;;  %869 = vmatprep.subr.mxu0 %v343_v1 }
  0x3c   :  { %193 = vmatprep.mubr.f32.mxu0 %v1034_v3  ;;  %870 = vmatpush3.msra.mxu0 %v343_v1  ;;  %v339_v3 = vld [vmem:[%s1614_s5 + $0x18] sm:$0xff] }
  0x3d   :  { %871 = vmatprep.subr.mxu0 %v342_v2  ;;  %919 = vmatpush3.msra.mxu1 %v345_v63 }
  0x3e   :  { %872 = vmatpush3.msra.mxu0 %v342_v2  ;;  %904 = vmatprep.subr.mxu1 %v344_v0 }
  0x3f   :  { %194 = vmatmul.mubr.f32.gmra.mxu0 %v42_v60  ;;  %873 = vmatprep.subr.mxu0 %v341_v4 }
  0x40   :  { %874 = vmatpush3.msra.mxu0 %v341_v4  ;;  %920 = vmatpush3.msra.mxu1 %v344_v0 }
  0x41   :  { %875 = vmatprep.subr.mxu0 %v340_v5  ;;  %905 = vmatprep.subr.mxu1 %v343_v1 }
  0x42   :  { %876 = vmatpush3.msra.mxu0 %v340_v5  ;;  %921 = vmatpush3.msra.mxu1 %v343_v1 }
  0x43   :  { %877 = vmatprep.subr.mxu0 %v339_v3  ;;  %906 = vmatprep.subr.mxu1 %v342_v2 }
  0x44   :  { %878 = vmatpush3.msra.mxu0 %v339_v3  ;;  %922 = vmatpush3.msra.mxu1 %v342_v2 }
  0x45   :  { %907 = vmatprep.subr.mxu1 %v341_v4  ;;  %879 = vmatprep.subr.mxu0 %v338_v6 }
  0x46   :  { %923 = vmatpush3.msra.mxu1 %v341_v4  ;;  %880 = vmatpush3.msra.mxu0 %v338_v6 }
  0x47   :  { %908 = vmatprep.subr.mxu1 %v340_v5  ;;  %881 = vmatprep.subr.mxu0 %v337_v7 }
  0x48   :  { %924 = vmatpush3.msra.mxu1 %v340_v5  ;;  %882 = vmatpush3.msra.mxu0 %v337_v7 }
  0x49   :  { %909 = vmatprep.subr.mxu1 %v339_v3  ;;  %883 = vmatprep.subr.mxu0 %v336_v8 }
  0x4a   :  { %925 = vmatpush3.msra.mxu1 %v339_v3  ;;  %884 = vmatpush3.msra.mxu0 %v336_v8 }
  0x4b   :  { %910 = vmatprep.subr.mxu1 %v338_v6 }
  0x4c   :  { %926 = vmatpush3.msra.mxu1 %v338_v6 }
  0x4d   :  { %911 = vmatprep.subr.mxu1 %v337_v7 }
  0x4e   :  { %927 = vmatpush3.msra.mxu1 %v337_v7 }
  0x4f   :  { %912 = vmatprep.subr.mxu1 %v336_v8 }
  0x50   :  { %928 = vmatpush3.msra.mxu1 %v336_v8 }
  0xe3   :  { %v153_v16 = vpop.f32.mrf.mxu0  ;;  %v843_v19 = vpop.f32.mrf.mxu1 }
  0xe4   :  { %v1325_v18 = vadd.f32 %v153_v16, %v1317_v14  ;;  %v295_v21 = vadd.f32 %v843_v19, %v758_v17 }
  0xe5   :  { %v155_v20 = vpop.f32.mrf.mxu0  ;;  %v289_v23 = vpop.f32.mrf.mxu1 }
  0xe6   :  { %v1328_v22 = vadd.f32 %v155_v20, %v1319_v15  ;;  %v290_v24 = vadd.f32 %v758_v17, %v289_v23  ;;  %v329_v31 = vmax.f32 %v295_v21, 0.0 }
  0xe7   :  { %v159_v25 = vpop.f32.mrf.mxu0 }
  0xe8   :  { %v1331_v26 = vadd.f32 %v159_v25, %v1317_v14  ;;  %v846_v27 = vpop.f32.mrf.mxu1  ;;  %v566_v28 = vmax.f32 %v1325_v18, %v1328_v22  ;;  %v328_v29 = vmax.f32 %v290_v24, 0.0 }
  0xe9   :  { %v161_v30 = vpop.f32.mrf.mxu0  ;;  %v305_v32 = vadd.f32 %v846_v27, %v758_v17 }
  0xea   :  { %v1336_v33 = vadd.f32 %v161_v30, %v1319_v15  ;;  %v299_v34 = vpop.f32.mrf.mxu1  ;;  %567 = vmax.xlane.f32.xlu0 %v566_v28  ;;  %885 = vmatprep.mubr.f32.mxu0 %v328_v29 }
  0xeb   :  { %v300_v35 = vadd.f32 %v758_v17, %v299_v34  ;;  %v165_v36 = vpop.f32.mrf.mxu0  ;;  %886 = vmatmul.mubr.f32.vlgmr.msra.gmra.mxu0 %v329_v31  ;;  %v331_v42 = vmax.f32 %v305_v32, 0.0 }
  0xec   :  { %v1339_v37 = vadd.f32 %v165_v36, %v1317_v14  ;;  %v849_v38 = vpop.f32.mrf.mxu1  ;;  %v569_v39 = vmax.f32 %v1331_v26, %v1336_v33 }
  0xed   :  { %v330_v40 = vmax.f32 %v300_v35, 0.0  ;;  %v167_v41 = vpop.f32.mrf.mxu0  ;;  %v315_v43 = vadd.f32 %v849_v38, %v758_v17 }
  0xee   :  { %v1344_v44 = vadd.f32 %v167_v41, %v1319_v15  ;;  %v309_v45 = vpop.f32.mrf.mxu1  ;;  %570 = vmax.xlane.f32.xlu0 %v569_v39 }
  0xef   :  { %v310_v46 = vadd.f32 %v758_v17, %v309_v45  ;;  %888 = vmatprep.mubr.f32.mxu0 %v330_v40  ;;  %v171_v47 = vpop.f32.mrf.mxu0  ;;  %v333_v53 = vmax.f32 %v315_v43, 0.0 }
  0xf0   :  { %v1347_v48 = vadd.f32 %v171_v47, %v1317_v14  ;;  %v852_v49 = vpop.f32.mrf.mxu1  ;;  %889 = vmatmul.mubr.f32.gmra.mxu0 %v331_v42  ;;  %v572_v50 = vmax.f32 %v1339_v37, %v1344_v44 }
  0xf1   :  { %v332_v51 = vmax.f32 %v310_v46, 0.0  ;;  %v173_v52 = vpop.f32.mrf.mxu0  ;;  %v325_v54 = vadd.f32 %v852_v49, %v758_v17 }
  0xf2   :  { %v1352_v55 = vadd.f32 %v173_v52, %v1319_v15  ;;  %v319_v56 = vpop.f32.mrf.mxu1  ;;  %573 = vmax.xlane.f32.xlu1 %v572_v50 }
  0xf3   :  { %v320_v57 = vadd.f32 %v758_v17, %v319_v56  ;;  %891 = vmatprep.mubr.f32.mxu1 %v332_v51  ;;  %v177_v58 = vpop.f32.mrf.mxu0  ;;  %v335_v63 = vmax.f32 %v325_v54, 0.0 }
  0xf4   :  { %v1355_v59 = vadd.f32 %v177_v58, %v1317_v14  ;;  %892 = vmatmul.mubr.f32.vlgmr.msra.gmra.mxu1 %v333_v53  ;;  %v575_v60 = vmax.f32 %v1347_v48, %v1352_v55 }
  0xf5   :  { %v334_v61 = vmax.f32 %v320_v57, 0.0  ;;  %v179_v62 = vpop.f32.mrf.mxu0 }
  0xf6   :  { %v1360_v0 = vadd.f32 %v179_v62, %v1319_v15  ;;  %576 = vmax.xlane.f32.xlu1 %v575_v60 }
  0xf7   :  { %894 = vmatprep.mubr.f32.mxu1 %v334_v61  ;;  %v183_v1 = vpop.f32.mrf.mxu0 }
  0xf8   :  { %v1363_v2 = vadd.f32 %v183_v1, %v1317_v14  ;;  %895 = vmatmul.mubr.f32.gmra.mxu1 %v335_v63  ;;  %v642_v4 = vmax.f32 %v1355_v59, %v1360_v0 }
  0xf9   :  { %v185_v5 = vpop.f32.mrf.mxu0 }
  0xfa   :  { %v1368_v3 = vadd.f32 %v185_v5, %v1319_v15  ;;  %643 = vmax.xlane.f32.xlu0 %v642_v4 }
  0xfb   :  { %v189_v6 = vpop.f32.mrf.mxu0 }
  0xfc   :  { %v1371_v7 = vadd.f32 %v189_v6, %v1317_v14  ;;  %v645_v8 = vmax.f32 %v1363_v2, %v1368_v3 }
  0xfd   :  { %v191_v9 = vpop.f32.mrf.mxu0 }
  0xfe   :  { %v1376_v10 = vadd.f32 %v191_v9, %v1319_v15  ;;  %646 = vmax.xlane.f32.xlu1 %v645_v8 }
  0xff   :  { %v195_v11 = vpop.f32.mrf.mxu0 }
 0x100   :  { %v1379_v12 = vadd.f32 %v195_v11, %v1317_v14  ;;  %v648_v13 = vmax.f32 %v1371_v7, %v1376_v10 }
 0x101   :  { %v197_v16 = vpop.f32.mrf.mxu0 }
 0x102   :  { %v1384_v17 = vadd.f32 %v197_v16, %v1319_v15  ;;  %649 = vmax.xlane.f32.xlu0 %v648_v13 }
 0x104   :  { %v651_v19 = vmax.f32 %v1379_v12, %v1384_v17 }
 0x106   :  { %652 = vmax.xlane.f32.xlu1 %v651_v19 }
 0x173   :  { %v568_v20 = vpop.xlane.xlu0 %567 }
 0x174   :  { %v578_v24 = vsub.f32 %v1325_v18, %v568_v20  ;;  %v579_v14 = vsub.f32 %v1328_v22, %v568_v20  ;;  %v1398_v18 = vld [vmem:[%s1617_s6] ss:$0 sm:$0xff] }
 0x176   :  { %v586_v29 = vmul.f32 1.442695, %v578_v24  ;;  %v588_v30 = vmul.f32 1.442695, %v579_v14 }
 0x177   :  { %v571_v23 = vpop.xlane.xlu0 %570 }
 0x178   :  { %v580_v25 = vsub.f32 %v1331_v26, %v571_v23  ;;  %v581_v27 = vsub.f32 %v1336_v33, %v571_v23  ;;  %930 = vpow2.f32 %v586_v29 }
 0x179   :  { %932 = vpow2.f32 %v588_v30 }
 0x17a   :  { %v590_v34 = vmul.f32 1.442695, %v580_v25  ;;  %v592_v22 = vmul.f32 1.442695, %v581_v27 }
 0x17b   :  { %v574_v21 = vpop.xlane.xlu1 %573 }
 0x17c   :  { %v582_v15 = vsub.f32 %v1339_v37, %v574_v21  ;;  %v583_v31 = vsub.f32 %v1344_v44, %v574_v21  ;;  %934 = vpow2.f32 %v590_v34  ;;  %v1407_v44 = vld [vmem:[%s1618_s7] ss:$0 sm:$0xff] }
 0x17d   :  { %936 = vpow2.f32 %v592_v22 }
 0x17e   :  { %v594_v36 = vmul.f32 1.442695, %v582_v15  ;;  %v596_v39 = vmul.f32 1.442695, %v583_v31 }
 0x17f   :  { %v577_v28 = vpop.xlane.xlu1 %576 }
 0x180   :  { %v584_v35 = vsub.f32 %v1347_v48, %v577_v28  ;;  %v585_v26 = vsub.f32 %v1352_v55, %v577_v28  ;;  %938 = vpow2.f32 %v594_v36 }
 0x181   :  { %940 = vpow2.f32 %v596_v39 }
 0x182   :  { %v598_v41 = vmul.f32 1.442695, %v584_v35  ;;  %v600_v45 = vmul.f32 1.442695, %v585_v26 }
 0x183   :  { %v644_v32 = vpop.xlane.xlu0 %643 }
 0x184   :  { %v654_v37 = vsub.f32 %v1355_v59, %v644_v32  ;;  %942 = vpow2.f32 %v598_v41  ;;  %v655_v55 = vsub.f32 %v1360_v0, %v644_v32 }
 0x185   :  { %944 = vpow2.f32 %v600_v45  ;;  %v1424_v19 = vpop.eup %930 }
 0x186   :  { %v662_v48 = vmul.f32 1.442695, %v654_v37  ;;  %v1428_v24 = vpop.eup %932 }
 0x187   :  { %v647_v33 = vpop.xlane.xlu1 %646 }
 0x188   :  { %v656_v42 = vsub.f32 %v1363_v2, %v647_v33  ;;  %v657_v49 = vsub.f32 %v1368_v3, %v647_v33  ;;  %946 = vpow2.f32 %v662_v48  ;;  %v664_v3 = vmul.f32 1.442695, %v655_v55 }
 0x189   :  { %v1430_v25 = vpop.eup %934 }
 0x18a   :  { %v666_v56 = vmul.f32 1.442695, %v656_v42  ;;  %v668_v62 = vmul.f32 1.442695, %v657_v49  ;;  %v1434_v30 = vpop.eup %936 }
 0x18b   :  { %v650_v58 = vpop.xlane.xlu0 %649  ;;  %v605_v36 = vadd.f32 %v1434_v30, %v1430_v25 }
 0x18c   :  { %948 = vpow2.f32 %v666_v56  ;;  %v658_v6 = vsub.f32 %v1371_v7, %v650_v58  ;;  %v659_v9 = vsub.f32 %v1376_v10, %v650_v58 }
 0x18d   :  { %950 = vpow2.f32 %v668_v62  ;;  %v1436_v31 = vpop.eup %938 }
 0x18e   :  { %952 = vpow2.f32 %v664_v3  ;;  %v670_v10 = vmul.f32 1.442695, %v658_v6  ;;  %v672_v27 = vmul.f32 1.442695, %v659_v9  ;;  %v1439_v35 = vpop.eup %940 }
 0x18f   :  { %v653_v51 = vpop.xlane.xlu1 %652  ;;  %v608_v42 = vadd.f32 %v1439_v35, %v1436_v31 }
 0x190   :  { %v660_v63 = vsub.f32 %v1379_v12, %v653_v51  ;;  %v661_v2 = vsub.f32 %v1384_v17, %v653_v51  ;;  %v504_v51 = vstv %s1619_s8 }
 0x191   :  { %v1441_v22 = vpop.eup %942 }
 0x192   :  { %v674_v16 = vmul.f32 1.442695, %v660_v63  ;;  %v676_v20 = vmul.f32 1.442695, %v661_v2  ;;  %v1444_v26 = vpop.eup %944 }
 0x194   :  { %954 = vpow2.f32 %v674_v16 }
 0x195   :  { %956 = vpow2.f32 %v676_v20  ;;  %v1446_v33 = vpop.eup %946 }
 0x196   :  { %958 = vpow2.f32 %v670_v10 }
 0x197   :  { %960 = vpow2.f32 %v672_v27 }
 0x199   :  { %v1450_v37 = vpop.eup %948 }
 0x19a   :  { %v1454_v39 = vpop.eup %950 }
 0x19b   :  { %v1458_v41 = vpop.eup %952 }
 0x1ab   :  { %v887_v38 = vpop.f32.mrf.mxu0 }
 0x1ac   :  { %v431_v40 = vadd.f32 %v887_v38, %v1398_v18  ;;  %v602_v38 = vadd.f32 %v1428_v24, %v1424_v19 }
 0x1ad   :  { %v425_v43 = vpop.f32.mrf.mxu0 }
 0x1ae   :  { %v465_v46 = vmax.f32 %v431_v40, 0.0  ;;  %v426_v47 = vadd.f32 %v1398_v18, %v425_v43  ;;  %v611_v40 = vadd.f32 %v1444_v26, %v1441_v22  ;;  %v1462_v43 = vpop.eup %954 }
 0x1af   :  { %v1466_v45 = vpop.eup %956 }
 0x1b0   :  { %v890_v50 = vpop.f32.mrf.mxu0  ;;  %v464_v52 = vmax.f32 %v426_v47, 0.0  ;;  %v480_v54 = vmul.f32 %v1407_v44, %v465_v46  ;;  %v1468_v46 = vpop.eup %958  ;;  %v678_v47 = vadd.f32 %v1458_v41, %v1446_v33  ;;  %v687_v49 = vadd.f32 %v1466_v45, %v1462_v43 }
 0x1b1   :  { %v441_v53 = vadd.f32 %v890_v50, %v1398_v18  ;;  %v1472_v48 = vpop.eup %960 }
 0x1b2   :  { %v435_v57 = vpop.f32.mrf.mxu0  ;;  %489 = vadd.xlane.f32.xlu1 %v480_v54  ;;  %v479_v61 = vmul.f32 %v1407_v44, %v464_v52  ;;  %v684_v50 = vadd.f32 %v1472_v48, %v1468_v46 }
 0x1b3   :  { %v467_v59 = vmax.f32 %v441_v53, 0.0  ;;  %v436_v60 = vadd.f32 %v1398_v18, %v435_v57 }
 0x1b4   :  { %v893_v1 = vpop.f32.mrf.mxu1  ;;  %487 = vadd.xlane.f32.xlu0 %v479_v61 }
 0x1b5   :  { %v466_v4 = vmax.f32 %v436_v60, 0.0  ;;  %v451_v0 = vadd.f32 %v893_v1, %v1398_v18  ;;  %v482_v5 = vmul.f32 %v1407_v44, %v467_v59 }
 0x1b6   :  { %v445_v8 = vpop.f32.mrf.mxu1 }
 0x1b7   :  { %v469_v11 = vmax.f32 %v451_v0, 0.0  ;;  %v446_v13 = vadd.f32 %v1398_v18, %v445_v8  ;;  %493 = vadd.xlane.f32.xlu1 %v482_v5  ;;  %v481_v12 = vmul.f32 %v1407_v44, %v466_v4 }
 0x1b8   :  { %v896_v17 = vpop.f32.mrf.mxu1 }
 0x1b9   :  { %v468_v21 = vmax.f32 %v446_v13, 0.0  ;;  %v461_v23 = vadd.f32 %v896_v17, %v1398_v18  ;;  %491 = vadd.xlane.f32.xlu0 %v481_v12  ;;  %v484_v7 = vmul.f32 %v1407_v44, %v469_v11 }
 0x1ba   :  { %v455_v14 = vpop.f32.mrf.mxu1 }
 0x1bb   :  { %v471_v28 = vmax.f32 %v461_v23, 0.0  ;;  %v456_v29 = vadd.f32 %v1398_v18, %v455_v14  ;;  %497 = vadd.xlane.f32.xlu1 %v484_v7  ;;  %v483_v15 = vmul.f32 %v1407_v44, %v468_v21 }
 0x1bd   :  { %v470_v32 = vmax.f32 %v456_v29, 0.0  ;;  %495 = vadd.xlane.f32.xlu0 %v483_v15  ;;  %v486_v34 = vmul.f32 %v1407_v44, %v471_v28 }
 0x1bf   :  { %501 = vadd.xlane.f32.xlu1 %v486_v34  ;;  %v485_v18 = vmul.f32 %v1407_v44, %v470_v32  ;;  %v681_v44 = vadd.f32 %v1454_v39, %v1450_v37 }
 0x1c1   :  { %499 = vadd.xlane.f32.xlu0 %v485_v18 }
 0x1c3   :  { %606 = vadd.xlane.f32.xlu1 %v605_v36 }
 0x1c5   :  { %603 = vadd.xlane.f32.xlu0 %v602_v38 }
 0x1c7   :  { %612 = vadd.xlane.f32.xlu1 %v611_v40 }
 0x1c9   :  { %609 = vadd.xlane.f32.xlu0 %v608_v42 }
 0x1cb   :  { %682 = vadd.xlane.f32.xlu1 %v681_v44 }
 0x1cd   :  { %679 = vadd.xlane.f32.xlu0 %v678_v47 }
 0x1cf   :  { %688 = vadd.xlane.f32.xlu1 %v687_v49 }
 0x1d1   :  { %685 = vadd.xlane.f32.xlu0 %v684_v50 }
 0x23b   :  { %v490_v52 = vpop.xlane.xlu1 %489 }
 0x23c   :  { %v1481_v53 = vadd.f32 %v504_v51, %v490_v52 }
 0x23d   :  { %v488_v54 = vpop.xlane.xlu0 %487 }
 0x23e   :  { %515 = vst.msk [vmem:[%s1620_s10 + $0x8] sm:$0xff] %vm513_vm0, %v1481_v53  ;;  %v1488_v55 = vadd.f32 %v504_v51, %v488_v54 }
 0x240   :  { %v494_v56 = vpop.xlane.xlu1 %493  ;;  %514 = vst.msk [vmem:[%s1620_s10] sm:$0xff] %vm513_vm0, %v1488_v55 }
 0x241   :  { %v1495_v57 = vadd.f32 %v504_v51, %v494_v56 }
 0x242   :  { %v492_v58 = vpop.xlane.xlu0 %491 }
 0x243   :  { %517 = vst.msk [vmem:[%s1620_s10 + $0x18] sm:$0xff] %vm513_vm0, %v1495_v57  ;;  %v1502_v59 = vadd.f32 %v504_v51, %v492_v58 }
 0x244   :  { %v498_v60 = vpop.xlane.xlu1 %497 }
 0x245   :  { %516 = vst.msk [vmem:[%s1620_s10 + $0x10] sm:$0xff] %vm513_vm0, %v1502_v59  ;;  %v1509_v61 = vadd.f32 %v504_v51, %v498_v60 }
 0x246   :  { %v496_v62 = vpop.xlane.xlu0 %495 }
 0x247   :  { %519 = vst.msk [vmem:[%s1620_s10 + $0x28] sm:$0xff] %vm513_vm0, %v1509_v61  ;;  %v523_v63 = vmax.f32 %v1481_v53, %v1509_v61  ;;  %v1518_v1 = vadd.f32 %v504_v51, %v496_v62 }
 0x248   :  { %v502_v2 = vpop.xlane.xlu1 %501 }
 0x249   :  { %v527_v4 = vsub.f32 %v1481_v53, %v523_v63  ;;  %v539_v0 = vsub.f32 %v1509_v61, %v523_v63  ;;  %518 = vst.msk [vmem:[%s1620_s10 + $0x20] sm:$0xff] %vm513_vm0, %v1518_v1  ;;  %v522_v5 = vmax.f32 %v1488_v55, %v1518_v1  ;;  %v1529_v3 = vadd.f32 %v504_v51, %v502_v2 }
 0x24a   :  { %v500_v6 = vpop.xlane.xlu0 %499 }
 0x24b   :  { %v532_v8 = vmul.f32 1.442695, %v527_v4  ;;  %v544_v9 = vmul.f32 1.442695, %v539_v0  ;;  %v526_v11 = vsub.f32 %v1488_v55, %v522_v5  ;;  %v538_v13 = vsub.f32 %v1518_v1, %v522_v5  ;;  %521 = vst.msk [vmem:[%s1620_s10 + $0x38] sm:$0xff] %vm513_vm0, %v1529_v3 }
 0x24c   :  { %v1540_v12 = vmax.f32 %v1495_v57, %v1529_v3  ;;  %v1542_v16 = vadd.f32 %v504_v51, %v500_v6  ;;  %v607_v51 = vpop.xlane.xlu1 %606 }
 0x24d   :  { %962 = vpow2.f32 %v532_v8  ;;  %v530_v17 = vmul.f32 1.442695, %v526_v11  ;;  %v542_v20 = vmul.f32 1.442695, %v538_v13 }
 0x24e   :  { %964 = vpow2.f32 %v544_v9  ;;  %v529_v21 = vsub.f32 %v1495_v57, %v1540_v12  ;;  %v541_v23 = vsub.f32 %v1529_v3, %v1540_v12  ;;  %520 = vst.msk [vmem:[%s1620_s10 + $0x30] sm:$0xff] %vm513_vm0, %v1542_v16  ;;  %v1555_v7 = vmax.f32 %v1502_v59, %v1542_v16  ;;  %v604_v54 = vpop.xlane.xlu0 %603 }
 0x24f   :  { %966 = vpow2.f32 %v530_v17 }
 0x250   :  { %968 = vpow2.f32 %v542_v20  ;;  %v536_v10 = vmul.f32 1.442695, %v529_v21  ;;  %v548_v14 = vmul.f32 1.442695, %v541_v23  ;;  %v528_v27 = vsub.f32 %v1502_v59, %v1555_v7  ;;  %v613_v56 = vpop.xlane.xlu1 %612 }
 0x251   :  { %v540_v28 = vsub.f32 %v1542_v16, %v1555_v7 }
 0x252   :  { %970 = vpow2.f32 %v536_v10  ;;  %v534_v29 = vmul.f32 1.442695, %v528_v27  ;;  %v610_v58 = vpop.xlane.xlu0 %609 }
 0x253   :  { %972 = vpow2.f32 %v548_v14  ;;  %v546_v15 = vmul.f32 1.442695, %v540_v28 }
 0x254   :  { %974 = vpow2.f32 %v534_v29  ;;  %v683_v6 = vpop.xlane.xlu1 %682 }
 0x255   :  { %976 = vpow2.f32 %v546_v15 }
 0x256   :  { %v680_v17 = vpop.xlane.xlu0 %679 }
 0x25a   :  { %v963_v32 = vpop.eup %962 }
 0x25b   :  { %v965_v34 = vpop.eup %964 }
 0x25c   :  { %v967_v18 = vpop.eup %966  ;;  %v551_v36 = vadd.f32 %v965_v34, %v963_v32  ;;  %v689_v32 = vpop.xlane.xlu1 %688 }
 0x25d   :  { %v969_v38 = vpop.eup %968 }
 0x25e   :  { %978 = vlog2.f32 %v551_v36  ;;  %v550_v40 = vadd.f32 %v969_v38, %v967_v18 }
 0x25f   :  { %v971_v42 = vpop.eup %970 }
 0x260   :  { %v973_v44 = vpop.eup %972  ;;  %980 = vlog2.f32 %v550_v40 }
 0x261   :  { %v975_v47 = vpop.eup %974  ;;  %v553_v49 = vadd.f32 %v973_v44, %v971_v42 }
 0x262   :  { %v977_v50 = vpop.eup %976 }
 0x263   :  { %982 = vlog2.f32 %v553_v49  ;;  %v552_v52 = vadd.f32 %v977_v50, %v975_v47 }
 0x265   :  { %984 = vlog2.f32 %v552_v52 }
 0x266   :  { %986 = vrcp.f32 %v607_v51 }
 0x267   :  { %988 = vrcp.f32 %v604_v54 }
 0x268   :  { %990 = vrcp.f32 %v613_v56 }
 0x269   :  { %992 = vrcp.f32 %v610_v58 }
 0x26a   :  { %994 = vrcp.f32 %v683_v6 }
 0x26b   :  { %v979_v60 = vpop.eup %978  ;;  %996 = vrcp.f32 %v680_v17 }
 0x26c   :  { %v557_v62 = vmul.f32 0.6931472, %v979_v60 }
 0x26d   :  { %v981_v2 = vpop.eup %980 }
 0x26e   :  { %v563_v4 = vadd.f32 %v557_v62, %v523_v63  ;;  %v555_v0 = vmul.f32 0.6931472, %v981_v2 }
 0x270   :  { %v983_v8 = vpop.eup %982  ;;  %v615_v9 = vsub.f32 %v1481_v53, %v563_v4  ;;  %v691_v11 = vsub.f32 %v1509_v61, %v563_v4  ;;  %v562_v13 = vadd.f32 %v555_v0, %v522_v5 }
 0x271   :  { %v561_v20 = vmul.f32 0.6931472, %v983_v8 }
 0x272   :  { %v985_v21 = vpop.eup %984  ;;  %v620_v23 = vmul.f32 1.442695, %v615_v9  ;;  %v696_v10 = vmul.f32 1.442695, %v691_v11  ;;  %v614_v14 = vsub.f32 %v1488_v55, %v562_v13  ;;  %v690_v63 = vsub.f32 %v1518_v1, %v562_v13 }
 0x273   :  { %v565_v27 = vadd.f32 %v561_v20, %v1540_v12  ;;  %v559_v28 = vmul.f32 0.6931472, %v985_v21  ;;  %v987_v36 = vpop.eup %986 }
 0x274   :  { %998 = vpow2.f32 %v620_v23  ;;  %v618_v53 = vmul.f32 1.442695, %v614_v14  ;;  %v694_v29 = vmul.f32 1.442695, %v690_v63  ;;  %v989_v40 = vpop.eup %988 }
 0x275   :  { %1000 = vpow2.f32 %v696_v10  ;;  %v617_v61 = vsub.f32 %v1495_v57, %v565_v27  ;;  %v693_v5 = vsub.f32 %v1529_v3, %v565_v27  ;;  %v564_v15 = vadd.f32 %v559_v28, %v1555_v7  ;;  %v686_v57 = vpop.xlane.xlu0 %685  ;;  %v991_v3 = vpop.eup %990 }
 0x276   :  { %1002 = vpow2.f32 %v618_v53  ;;  %v993_v7 = vpop.eup %992 }
 0x277   :  { %1004 = vpow2.f32 %v694_v29  ;;  %v624_v55 = vmul.f32 1.442695, %v617_v61  ;;  %v700_v34 = vmul.f32 1.442695, %v693_v5  ;;  %v616_v1 = vsub.f32 %v1502_v59, %v564_v15  ;;  %v995_v42 = vpop.eup %994 }
 0x278   :  { %v692_v12 = vsub.f32 %v1542_v16, %v564_v15  ;;  %1006 = vrcp.f32 %v689_v32  ;;  %v997_v44 = vpop.eup %996 }
 0x279   :  { %1008 = vpow2.f32 %v624_v55  ;;  %v622_v18 = vmul.f32 1.442695, %v616_v1 }
 0x27a   :  { %1010 = vpow2.f32 %v700_v34  ;;  %v698_v38 = vmul.f32 1.442695, %v692_v12 }
 0x27b   :  { %1012 = vpow2.f32 %v622_v18 }
 0x27c   :  { %1014 = vpow2.f32 %v698_v38 }
 0x27d   :  { %1016 = vrcp.f32 %v686_v57 }
 0x281   :  { %v999_v47 = vpop.eup %998 }
 0x282   :  { %v1001_v49 = vpop.eup %1000  ;;  %v631_v59 = vmul.f32 %v999_v47, %v987_v36 }
 0x283   :  { %v1003_v50 = vpop.eup %1002  ;;  %v707_v16 = vmul.f32 %v1001_v49, %v995_v42 }
 0x284   :  { %v1005_v51 = vpop.eup %1004  ;;  %v636_v52 = vmul.f32 %v1430_v25, %v631_v59  ;;  %v637_v54 = vmul.f32 %v1434_v30, %v631_v59  ;;  %v630_v56 = vmul.f32 %v1003_v50, %v989_v40 }
 0x285   :  { %v1007_v58 = vpop.eup %1006  ;;  %v712_v60 = vmul.f32 %v1450_v37, %v707_v16  ;;  %v713_v62 = vmul.f32 %v1454_v39, %v707_v16  ;;  %v706_v2 = vmul.f32 %v1005_v51, %v997_v44 }
 0x286   :  { %v1009_v4 = vpop.eup %1008  ;;  %v634_v0 = vmul.f32 %v1424_v19, %v630_v56  ;;  %v635_v6 = vmul.f32 %v1428_v24, %v630_v56 }
 0x287   :  { %v1011_v8 = vpop.eup %1010  ;;  %v633_v9 = vmul.f32 %v1009_v4, %v991_v3  ;;  %v720_v11 = vadd.f32 %v712_v60, %v636_v52  ;;  %v721_v13 = vadd.f32 %v713_v62, %v637_v54  ;;  %v710_v25 = vmul.f32 %v1446_v33, %v706_v2 }
 0x288   :  { %v1013_v17 = vpop.eup %1012  ;;  %v711_v30 = vmul.f32 %v1458_v41, %v706_v2  ;;  %v709_v20 = vmul.f32 %v1011_v8, %v1007_v58 }
 0x289   :  { %v1015_v21 = vpop.eup %1014  ;;  %v640_v37 = vmul.f32 %v1441_v22, %v633_v9  ;;  %v641_v39 = vmul.f32 %v1444_v26, %v633_v9  ;;  %v632_v23 = vmul.f32 %v1013_v17, %v993_v7  ;;  %1018 = vlog2.f32 %v720_v11 }
 0x28a   :  { %v1017_v19 = vpop.eup %1016  ;;  %1020 = vlog2.f32 %v721_v13  ;;  %v718_v24 = vadd.f32 %v710_v25, %v634_v0  ;;  %v719_v10 = vadd.f32 %v711_v30, %v635_v6  ;;  %v716_v14 = vmul.f32 %v1462_v43, %v709_v20 }
 0x28b   :  { %v638_v63 = vmul.f32 %v1436_v31, %v632_v23  ;;  %v639_v33 = vmul.f32 %v1439_v35, %v632_v23  ;;  %v717_v41 = vmul.f32 %v1466_v45, %v709_v20  ;;  %v708_v27 = vmul.f32 %v1017_v19, %v1015_v21 }
 0x28c   :  { %1022 = vlog2.f32 %v718_v24  ;;  %v724_v28 = vadd.f32 %v716_v14, %v640_v37 }
 0x28d   :  { %1024 = vlog2.f32 %v719_v10  ;;  %v725_v22 = vadd.f32 %v717_v41, %v641_v39  ;;  %v714_v26 = vmul.f32 %v1468_v46, %v708_v27  ;;  %v715_v53 = vmul.f32 %v1472_v48, %v708_v27 }
 0x28e   :  { %1026 = vlog2.f32 %v724_v28 }
 0x28f   :  { %1028 = vlog2.f32 %v725_v22  ;;  %v722_v29 = vadd.f32 %v714_v26, %v638_v63  ;;  %v723_v61 = vadd.f32 %v715_v53, %v639_v33 }
 0x291   :  { %1030 = vlog2.f32 %v722_v29 }
 0x292   :  { %1032 = vlog2.f32 %v723_v61 }
 0x296   :  { %v1019_v31 = vpop.eup %1018 }
 0x297   :  { %v1021_v43 = vpop.eup %1020  ;;  %v731_v35 = vmul.f32 0.6931472, %v1019_v31 }
 0x298   :  { %v733_v5 = vmul.f32 0.6931472, %v1021_v43 }
 0x299   :  { %v1023_v45 = vpop.eup %1022  ;;  %744 = vst [vmem:[%s1621_s9 + $0x10] sm:$0xff] %v731_v35 }
 0x29a   :  { %v1025_v15 = vpop.eup %1024  ;;  %745 = vst [vmem:[%s1621_s9 + $0x18] sm:$0xff] %v733_v5  ;;  %v727_v46 = vmul.f32 0.6931472, %v1023_v45 }
 0x29b   :  { %v1027_v48 = vpop.eup %1026  ;;  %v729_v32 = vmul.f32 0.6931472, %v1025_v15 }
 0x29c   :  { %v1029_v55 = vpop.eup %1028  ;;  %742 = vst [vmem:[%s1621_s9] sm:$0xff] %v727_v46  ;;  %v739_v34 = vmul.f32 0.6931472, %v1027_v48 }
 0x29d   :  { %743 = vst [vmem:[%s1621_s9 + $0x8] sm:$0xff] %v729_v32  ;;  %v741_v1 = vmul.f32 0.6931472, %v1029_v55 }
 0x29e   :  { %v1031_v12 = vpop.eup %1030  ;;  %748 = vst [vmem:[%s1621_s9 + $0x30] sm:$0xff] %v739_v34 }
 0x29f   :  { %v1033_v18 = vpop.eup %1032  ;;  %749 = vst [vmem:[%s1621_s9 + $0x38] sm:$0xff] %v741_v1  ;;  %v735_v36 = vmul.f32 0.6931472, %v1031_v12 }
 0x2a0   :  { %v737_v38 = vmul.f32 0.6931472, %v1033_v18 }
 0x2a1   :  { %746 = vst [vmem:[%s1621_s9 + $0x20] sm:$0xff] %v735_v36 }
 0x2a2   :  { %747 = vst [vmem:[%s1621_s9 + $0x28] sm:$0xff] %v737_v38 }

</bundles_post_ra>
